<compile_context>
chip_gen: v6e
topology: v6e:2x2x1
jax: 0.10.0
libtpu: 0.0.40
codegen_flags: <defaults>
</compile_context>

<pallas_src>
import jax
import jax.numpy as jnp
from jax.experimental import pallas as pl
from jax.experimental.pallas import tpu as pltpu


def _round_up(x: int, m: int) -> int:
    return ((x + m - 1) // m) * m


def _detect_head_kernel(w_ref, b_ref, x_ref, o_ref):
    # w_ref: (Cout_pad, Cin)   b_ref: (Cout_pad, 1)
    # x_ref: (Cin, TM)         o_ref: (Cout_pad, TM)   -- TM is lane-dense
    acc = jnp.dot(w_ref[...], x_ref[...], preferred_element_type=jnp.float32)
    o_ref[...] = (acc + b_ref[...]).astype(o_ref.dtype)


def _choose_tm(hw_pad, cin, cout_pad, target_tm=2048, vmem_budget_bytes=8 << 20):
    """Largest spatial tile (multiple of 128) that divides hw_pad, is <= target_tm,
    and keeps double-buffered in+out f32 tiles within a conservative VMEM budget
    (safe on all generations, including v7x's 64 MiB VMEM)."""
    nblk = hw_pad // 128
    bytes_per_128_cols = 2 * (cin + cout_pad) * 4 * 128  # 2x-buffered in+out, f32
    kmax = max(1, min(target_tm // 128, nblk, vmem_budget_bytes // bytes_per_128_cols))
    for k in range(kmax, 0, -1):
        if nblk % k == 0:
            return 128 * k
    return 128


def detect_head_conv1x1(x_nc_hw, w, b):
    """1x1 conv on an NCHW activation flattened to (N, Cin, HW).

    w: (Cout_pad, Cin)  -- PyTorch Conv2d weight with the trailing 1x1 squeezed.
    b: (Cout_pad, 1)
    Returns (N, Cout_pad, HW_pad) with HW_pad = round_up(HW, 128); the caller
    slices off the channel / spatial padding.
    """
    N, Cin, HW = x_nc_hw.shape
    Cout_pad = w.shape[0]
    HW_pad = _round_up(HW, 128)
    if HW_pad != HW:
        # Zero-pad the spatial (lane) axis so every tile is lane-dense; the
        # padded columns are sliced off by the caller.
        x_nc_hw = jnp.pad(x_nc_hw, ((0, 0), (0, 0), (0, HW_pad - HW)))
    tm = _choose_tm(HW_pad, Cin, Cout_pad)
    grid = (N, HW_pad // tm)

    return pl.pallas_call(
        _detect_head_kernel,
        out_shape=jax.ShapeDtypeStruct((N, Cout_pad, HW_pad), jnp.float32),
        grid_spec=pltpu.PrefetchScalarGridSpec(
            num_scalar_prefetch=0,
            grid=grid,
            in_specs=[
                pl.BlockSpec((Cout_pad, Cin), lambda n, m: (0, 0)),      # weights (resident)
                pl.BlockSpec((Cout_pad, 1), lambda n, m: (0, 0)),        # bias (resident)
                pl.BlockSpec((None, Cin, tm), lambda n, m: (n, 0, m)),   # activations
            ],
            out_specs=pl.BlockSpec((None, Cout_pad, tm), lambda n, m: (n, 0, m)),
        ),
        compiler_params=pltpu.CompilerParams(
            # Independent output tiles on both axes: v7x megacore can shard
            # either; a no-op on single-TC v5e/v6e.
            dimension_semantics=("parallel", "parallel"),
        ),
    )(w, b, x_nc_hw)


class Detect:
    """JAX/Pallas port of the PyTorch Detect module (forward pass)."""

    def __init__(self, in_channels, anchor_grids, num_classes, key):
        self.nl = len(anchor_grids)
        self.na = len(anchor_grids[0]) // 2
        self.anchors = jnp.asarray(anchor_grids, jnp.float32).reshape(self.nl, -1, 2)
        self.no = num_classes + 5
        self.cout = self.no * self.nl
        self.cout_pad = _round_up(self.cout, 8)  # sublane-aligned channel axis
        # Deterministic synthetic parameters (PyTorch Conv2d(ch, no*nl, 1)).
        # Stored as (Cout_pad, Cin) -- exactly the Conv2d weight orientation
        # with the 1x1 squeezed, so no transpose is ever needed.
        self.weights = []
        self.biases = []
        for i, ch in enumerate(in_channels):
            kw, kb = jax.random.split(jax.random.fold_in(key, i))
            w = jax.random.normal(kw, (self.cout, ch), jnp.float32) * 0.05
            bias = jax.random.normal(kb, (self.cout,), jnp.float32) * 0.05
            w_pad = jnp.zeros((self.cout_pad, ch), jnp.float32).at[: self.cout].set(w)
            b_pad = jnp.zeros((self.cout_pad, 1), jnp.float32).at[: self.cout, 0].set(bias)
            self.weights.append(w_pad)
            self.biases.append(b_pad)

    def __call__(self, xs):
        outs = []
        for i, x in enumerate(xs):
            N, C, H, W = x.shape
            # NCHW is already (N, C, H*W) in memory -- no transpose needed.
            y = detect_head_conv1x1(x.reshape(N, C, H * W), self.weights[i], self.biases[i])
            # Slice padding, then match PyTorch:
            #   view(N, nl, no, H, W).permute(0, 1, 3, 4, 2)
            y = y[:, : self.cout, : H * W].reshape(N, self.nl, self.no, H, W)
            y = jnp.transpose(y, (0, 1, 3, 4, 2))  # (N, nl, H, W, no)
            outs.append(y)
        return outs


if __name__ == "__main__":
    key = jax.random.PRNGKey(0)
    in_channels = [4, 8, 16]
    anchor_grids = [
        [10, 13, 16, 30, 33, 23],
        [30, 61, 62, 45, 59, 119],
        [116, 90, 156, 198, 373, 326],
    ]
    num_classes = 3  # no = 8, Cout = no * nl = 24
    det = Detect(in_channels, anchor_grids, num_classes, key)

    spatial = [16, 8, 4]
    xs = []
    for i, (ch, s) in enumerate(zip(in_channels, spatial)):
        xs.append(
            jax.random.normal(
                jax.random.fold_in(key, 100 + i), (2, ch, s, s), jnp.float32
            )
        )

    outs = det(xs)
    outs = jax.block_until_ready(outs)

    # Pure-JAX reference check of the Pallas 1x1-conv path.
    for i, x in enumerate(xs):
        N, C, H, W = x.shape
        w = det.weights[i][: det.cout]          # (Cout, Cin)
        b = det.biases[i][: det.cout, 0]        # (Cout,)
        ref = jnp.einsum("nchw,oc->nohw", x, w) + b[None, :, None, None]
        ref = ref.reshape(N, det.nl, det.no, H, W).transpose(0, 1, 3, 4, 2)
        assert outs[i].shape == (N, det.nl, H, W, det.no)
        assert jnp.allclose(outs[i], ref, atol=1e-4, rtol=1e-4), f"mismatch at level {i}"

    print("KERNEL_OK")
</pallas_src>

<mosaic_0001>
module attributes {stable_mosaic.version = 11 : i64} {
  func.func @_detect_head_kernel(%arg0: i32, %arg1: i32, %arg2: memref<24x4xf32, #tpu.memory_space<vmem>>, %arg3: memref<24x1xf32, #tpu.memory_space<vmem>>, %arg4: memref<1x4x256xf32, #tpu.memory_space<vmem>>, %arg5: memref<1x24x256xf32, #tpu.memory_space<vmem>>) attributes {dimension_semantics = [#tpu.dimension_semantics<parallel>, #tpu.dimension_semantics<parallel>], iteration_bounds = array<i64: 2, 1>, scalar_prefetch = 0 : i64, scratch_operands = 0 : i64, tpu.core_type = #tpu.core_type<tc>, window_params = [{pipeline_mode = #tpu.pipeline_mode<synchronous>, transform_indices = @transform_0, window_bounds = array<i64: 24, 4>}, {pipeline_mode = #tpu.pipeline_mode<synchronous>, transform_indices = @transform_1, window_bounds = array<i64: 24, 1>}, {transform_indices = @transform_2, window_bounds = array<i64: 1, 4, 256>}, {transform_indices = @transform_3, window_bounds = array<i64: 1, 24, 256>}]} {
    %c0 = arith.constant 0 : index
    %c0_0 = arith.constant 0 : index
    %0 = vector.load %arg2[%c0, %c0_0] : memref<24x4xf32, #tpu.memory_space<vmem>>, vector<24x4xf32>
    %c0_1 = arith.constant 0 : index
    %c0_2 = arith.constant 0 : index
    %c0_3 = arith.constant 0 : index
    %1 = vector.load %arg4[%c0_1, %c0_2, %c0_3] : memref<1x4x256xf32, #tpu.memory_space<vmem>>, vector<1x4x256xf32>
    %2 = vector.shape_cast %1 : vector<1x4x256xf32> to vector<4x256xf32>
    %cst = arith.constant dense<0.000000e+00> : vector<24x256xf32>
    %3 = tpu.matmul %0, %2, %cst {dimension_numbers = #tpu.dot_dimension_numbers<[1], [0], [0], [1], [0, 0, 1, 1], [], []>} : vector<24x4xf32>, vector<4x256xf32>, vector<24x256xf32> -> vector<24x256xf32>
    %c0_4 = arith.constant 0 : index
    %c0_5 = arith.constant 0 : index
    %4 = vector.load %arg3[%c0_4, %c0_5] : memref<24x1xf32, #tpu.memory_space<vmem>>, vector<24x1xf32>
    %5 = vector.broadcast %4 : vector<24x1xf32> to vector<24x256xf32>
    %6 = arith.addf %3, %5 : vector<24x256xf32>
    %c0_6 = arith.constant 0 : index
    %c0_7 = arith.constant 0 : index
    %c0_8 = arith.constant 0 : index
    %7 = vector.load %arg5[%c0_6, %c0_7, %c0_8] : memref<1x24x256xf32, #tpu.memory_space<vmem>>, vector<1x24x256xf32>
    %8 = vector.shape_cast %7 : vector<1x24x256xf32> to vector<24x256xf32>
    %9 = vector.shape_cast %6 : vector<24x256xf32> to vector<1x24x256xf32>
    tpu.vector_store %arg5[%c0_6, %c0_7, %c0_8], %9 {strides = array<i32>} : memref<1x24x256xf32, #tpu.memory_space<vmem>>, vector<1x24x256xf32>,
    return
  }
  func.func @transform_0(%arg0: i32, %arg1: i32) -> (i32, i32) {
    %c0_i32 = arith.constant 0 : i32
    %c0_i32_0 = arith.constant 0 : i32
    %c0_i32_1 = arith.constant 0 : i32
    return %c0_i32, %c0_i32_0 : i32, i32
  }
  func.func @transform_1(%arg0: i32, %arg1: i32) -> (i32, i32) {
    %c0_i32 = arith.constant 0 : i32
    %c0_i32_0 = arith.constant 0 : i32
    %c0_i32_1 = arith.constant 0 : i32
    return %c0_i32, %c0_i32_0 : i32, i32
  }
  func.func @transform_2(%arg0: i32, %arg1: i32) -> (i32, i32, i32) {
    %c0_i32 = arith.constant 0 : i32
    %c0_i32_0 = arith.constant 0 : i32
    return %arg0, %c0_i32, %arg1 : i32, i32, i32
  }
  func.func @transform_3(%arg0: i32, %arg1: i32) -> (i32, i32, i32) {
    %c0_i32 = arith.constant 0 : i32
    %c0_i32_0 = arith.constant 0 : i32
    return %arg0, %c0_i32, %arg1 : i32, i32, i32
  }
}

</mosaic_0001>

<bundles_post_ra>
// kernel: tpu_custom_call.1
= control target key start
LH: loop header
LB: loop body
LE: loop exit
PB: predicated region body
PF: predicated region fallthrough
CT: control target
= control target key end

     0   :  { %8 = vsyncpa [#allocation3], 0  ;;  %s740_s0 = inlined_call_operand.vmem [shape: f32[24,4], index: 0, kind: input, shape index: {}]   ;;  %s741_s1 = inlined_call_operand.vmem [shape: f32[24,1], index: 1, kind: input, shape index: {}]   ;;  %s742_s2 = inlined_call_operand.vmem [shape: f32[2,4,256], index: 2, kind: input, shape index: {}]   ;;  %s743_s3 = inlined_call_operand.hbm [shape: f32[2,24,256], index: 3, kind: output, shape index: {}]  }
   0x1   :  { %10 = vsyncpa [#allocation3 + $0x1], 0  ;;  %s608_s12 = smov 0   ;;  %s610_s13 = smov 0  }
   0x2   :  { %s612_s14 = smov 0   ;;  %s614_s15 = smov 0  }
   0x3   :  { %s616_s16 = smov 0   ;;  %s618_s17 = smov 0  }
   0x4 LB: > { %s423_s18 = sadd.s32 4294967295, %s581_s17   ;;  %s424_s19 = sadd.s32 4294967294, %s581_s17   ;;  %s581_s17 = sphi %s618_s17, %s16_s17   ;;  %s577_s16 = sphi %s616_s16, %s750_s16   ;;  %s573_s15 = sphi %s614_s15, %s749_s15   ;;  %s569_s14 = sphi %s612_s14, %s748_s14   ;;  %s565_s13 = sphi %s610_s13, %s747_s13   ;;  %s561_s12 = sphi %s608_s12, %s746_s12  }
   0x5   : > { %s28_s20 = sadd.s32 1, %s577_s16  ;;  %s107_s21 = sadd.s32 1, %s569_s14 }
   0x6   : > { %p30_p0 = scmp.ge.s32.totalorder %s28_s20, 2  ;;  %p117_p1 = scmp.ne.s32.totalorder %s569_s14, %s565_s13 }
   0x7   : > { %p118_p2 = scmp.eq.s32.totalorder %s423_s18, 1  ;;  %p123_p3 = scmp.ne.s32.totalorder %s565_s13, %s561_s12 }
   0x8   : > { %s752_s20 = smov (%p30_p0, %s28_s20), 0  ;;  %p124_p5 = scmp.eq.s32.totalorder %s424_s19, 1 }
   0x9   : > { %p648_p4 = por %p118_p2, %p117_p1  ;;  %s102_s23 = ssub.s32 %s577_s16, %s752_s20 }
   0xa   : > { %p427_p6 = scmp.ge.s32.totalorder %s581_s17, 1  ;;  %p105_p7 = scmp.eq.s32.totalorder %s102_s23, 0 }
   0xb   : > { %p655_p8 = por %p124_p5, %p123_p3  ;;  %p161_p9 = scmp.lt.s32.totalorder %s581_s17, 3 }
   0xc   : > { %s661_s25 = scalar_select %p105_p7, %s569_s14, %s107_s21  }
   0xd   : > { %p162_p10 = pnand %p427_p6, %p161_p9 }
   0xe   : > { %p190_p11 = scmp.lt.s32.totalorder (!%p162_p10), %s573_s15, 1  ;;  %s186_s26 = sand.u32 (!%p162_p10), 1, %s565_s13  }
   0xf   : > { %165 = sbr.rel (%p162_p10) target bundleno = 245 (0xf5), region = 32  ;;  %s695_s6 = scalar_lea.sflag (!%p162_p10), [#allocation3], %s186_s26 }
  0x10   : > { %s441_s27 = smul.u32 (!%p162_p10), 48, %s186_s26  ;;  %s585_s8 = smov (!%p162_p10), [#allocation2]  }
  0x12   : > { %s188_s29 = scalar_lea.vmem (!%p162_p10), [#allocation2], %s441_s27 }
  0x13   : > { %s344_s30 = sshll.u32 (!%p162_p10), %s188_s29, 4  ;;  %s688_s30 = int_to_ptr.vmem [resolvable:$true] %s344_s30 }
  0x14   : > { %v583_v0 = vmov 0.0   ;;  %v204_v1 = vld [vmem:[%s741_s1] sm:$0xff]  ;;  %s191_s28 = scalar_select %p190_p11, %s573_s15, 1  ;;  %v584_v2 = vmov 0   ;;  %v206_v3 = vld [vmem:[%s741_s1 + $0x10] sm:$0xff]  ;;  %v205_v4 = vld [vmem:[%s741_s1 + $0x8] sm:$0xff] }
  0x15   : > { %303 = vmatprep.mubr.f32.mxu0 %v583_v0  ;;  %309 = vmatprep.mubr.f32.mxu1 %v583_v0  ;;  %vm234_vm0 = vcmask 1043456   ;;  %v200_v7 = vld [vmem:[%s740_s0] sm:$0xff]  ;;  %vm224_vm1 = vcmask 31744   ;;  %v201_v8 = vld [vmem:[%s740_s0 + $0x8] sm:$0xff]  ;;  %v202_v9 = vld [vmem:[%s740_s0 + $0x10] sm:$0xff]  ;;  %s505_s7 = scalar_lea.vmem %s688_s30, 768 }
  0x16   : > { %502 = vset.pattern.permute.xlu0 %v584_v2  ;;  %503 = vset.pattern.permute.xlu1 %v584_v2  ;;  %s438_s4 = sshll.u32 %s191_s28, 3  ;;  %s442_s28 = smul.u32 768, %s573_s15 }
  0x17   : > { %209 = vperm.xlu0 %502, %v204_v1   ;;  %219 = vperm.xlu1 %503, %v206_v3   ;;  %s197_s9 = scalar_lea.vmem %s742_s2, %s438_s4  ;;  %p506_p12 = scmp.ne.s32.totalorder %s688_s30, %s505_s7 }
  0x18   : > { %v203_v5 = vld [vmem:[%s197_s9] sm:$0xff]  ;;  %s693_s15 = scalar_lea.hbm %s743_s3, %s442_s28  ;;  %s509_s9 = sshll.u32 %s585_s8, 4  ;;  %s510_s9 = int_to_ptr.vmem [resolvable:$false] %s509_s9 }
  0x19   : > { %v223_v6 = vcombine.high %v203_v5, %v203_v5  ;;  %p507_p13 = pnand %p506_p12, %p648_p4  ;;  %s511_s10 = scalar_lea.vmem %s510_s9, 1536 }
  0x1a   : > { %p512_p1 = scmp.lt.s32.totalorder %s688_s30, %s510_s9  ;;  %p513_p2 = scmp.lt.s32.totalorder %s511_s10, %s505_s7 }
  0x1b   : > { %214 = vperm.xlu0 %502, %v205_v4   ;;  %430 = vmatprep.subr.msk.mxu0 %vm234_vm0, %v223_v6  ;;  %p508_p0 = pneg %p507_p13 }
  0x1c   : > { %439 = vmatprep.subr.msk.mxu1 %vm234_vm0, %v223_v6  ;;  %431 = vmatpush1.msk.msra.mxu0 %vm234_vm0, %v203_v5  ;;  %p514_p3 = por %p513_p2, %p512_p1 }
  0x1d   : > { %440 = vmatpush1.msk.msra.mxu1 %vm234_vm0, %v203_v5  ;;  %432 = vmatmul.mubr.msk.f32.vlgmr.msra.gmra.mxu0 %vm224_vm1, %v200_v7 }
  0x1e   : > { %433 = vmatmul.mubr.msk.f32.vlgmr.msra.gmra.mxu1 %vm224_vm1, %v201_v8  ;;  %p515_p5 = pnand %p514_p3, %p508_p0 }
  0x1f   : > { %315 = vmatprep.mubr.f32.mxu1 %v583_v0 }
  0x22   : > { %434 = vmatmul.mubr.msk.f32.gmra.mxu1 %vm224_vm1, %v202_v9 }
  0x92   : > { %v210_v10 = vpop.permute.xlu0 %209  ;;  %v220_v16 = vpop.permute.xlu1 %219 }
  0x96   : > { %v215_v11 = vpop.permute.xlu0 %214 }
  0xdd   : > { %v305_v12 = vpop.f32.mrf.mxu0 }
  0xde   : > { %v311_v13 = vpop.f32.mrf.mxu1  ;;  %v306_v14 = vadd.f32 %v305_v12, %v210_v10 }
  0xdf   : > { %v312_v15 = vadd.f32 %v311_v13, %v215_v11  ;;  %v307_v17 = vpop.f32.mrf.mxu0 }
  0xe0   : > { %v313_v18 = vpop.f32.mrf.mxu1  ;;  %322 = vst [vmem:[%s188_s29] sm:$0xff] %v306_v14  ;;  %v308_v19 = vadd.f32 %v307_v17, %v210_v10 }
  0xe1   : > { %324 = vst [vmem:[%s188_s29 + $0x10] sm:$0xff] %v312_v15  ;;  %v314_v20 = vadd.f32 %v313_v18, %v215_v11 }
  0xe2   : > { %v317_v21 = vpop.f32.mrf.mxu1  ;;  %323 = vst [vmem:[%s188_s29 + $0x8] sm:$0xff] %v308_v19 }
  0xe3   : > { %325 = vst [vmem:[%s188_s29 + $0x18] sm:$0xff] %v314_v20  ;;  %v318_v22 = vadd.f32 %v317_v21, %v220_v16 }
  0xe4   : > { %v319_v23 = vpop.f32.mrf.mxu1 }
  0xe5   : > { %326 = vst [vmem:[%s188_s29 + $0x20] sm:$0xff] %v318_v22  ;;  %v320_v24 = vadd.f32 %v319_v23, %v220_v16 }
  0xe7   : > { %327 = vst [vmem:[%s188_s29 + $0x28] sm:$0xff] %v320_v24 }
  0xe8   : > { %518 = shalt.err (!%p515_p5)
}
  0xe9   : > { %s519_s11 = scalar_lea.hbm %s693_s15, 768  ;;  %s523_s21 = scalar_lea.hbm %s743_s3, 1536 }
  0xea   : > { %p520_p6 = scmp.ne.s32.totalorder %s693_s15, %s519_s11  ;;  %p524_p10 = scmp.lt.s32.totalorder %s693_s15, %s743_s3 }
  0xeb   : > { %p525_p11 = scmp.lt.s32.totalorder %s523_s21, %s519_s11 }
  0xec   : > { %p521_p7 = pnand %p520_p6, %p648_p4 }
  0xed   : > { %p526_p12 = por %p525_p11, %p524_p10 }
  0xee   : > { %p522_p9 = pneg %p521_p7 }
  0xf0   : > { %p527_p13 = pnand %p526_p12, %p522_p9 }
  0xf2   : > { %530 = shalt.err (!%p527_p13)
}
  0xf3   : > { %s586_s27 = smov 256   ;;  %s587_s28 = smov 16  }
  0xf4   : > { %443 = dma.vmem_to_hbm [thread:$0]  (%p648_p4), %s688_s30, 768, %s693_s15, %s695_s6, %s586_s27, %s586_s27, %s587_s28  }
  0xf5 PF: > { %p449_p0 = scmp.ge.s32.totalorder %s581_s17, 2  ;;  %s359_s29 = sand.u32 1, %s561_s12  }
  0xf6   : > { %s360_s4 = scalar_lea.sflag [#allocation3], %s359_s29 }
  0xf7   : > { %p446_p1 = pnand %p449_p0, %p655_p8 }
  0xf9   : > { %p447_p2 = pneg %p446_p1 }
  0xfb   : > { %556 = dma.done.wait (%p447_p2), %s360_s4, 768  }
  0xfc   : > { %558 = vsyncadd (%p447_p2), %s360_s4, 4294966528  ;;  %s16_s17 = sadd.s32 1, %s581_s17   ;;  %s746_s12 = smov %s565_s13 }
  0xfd   : > { %p13_p3 = scmp.ge.s32.totalorder %s16_s17, 4   ;;  %s747_s13 = smov %s569_s14 }
  0xfe   : > { %s748_s14 = smov %s661_s25  ;;  %s749_s15 = smov %s577_s16 }
  0xff   : > { %s750_s16 = smov %s752_s20  ;;  %15 = sbr.rel (!%p13_p3) target bundleno = 4 (0x4), region = 67 }
 0x104   :  { %365 = vsyncpa [#allocation3], 1 }
 0x105   :  { %367 = vsyncpa [#allocation3 + $0x1], 1 }

</bundles_post_ra>
